<compile_context>
chip_gen: v5e
topology: v5e:2x2
jax: 0.10.0
libtpu: 0.0.40
codegen_flags: <defaults>
</compile_context>

<pallas_src>
import jax
import jax.numpy as jnp
from jax.experimental import pallas as pl
from jax.experimental.pallas import tpu as pltpu  # noqa: F401  (kept for parity)

# ---- module hyper-parameters (args.*) -------------------------------------
N_AGENTS = 4          # self.num_agents
BATCH = 2             # batch_size
INPUT_DIM = 16        # input_shape
HIDDEN_DIM = 32       # args.hidden_dim
MSG_HIDDEN_DIM = 32   # args.msg_hidden_dim (must equal hidden_dim to chain)
N_ACTIONS = 8         # args.n_actions
K = 2                 # self.K message-passing rounds

BN = BATCH * N_AGENTS         # 8 fused rows = one full f32 sublane tile

# packed-parameter slab row offsets (every section starts on an 8-row boundary)
_ENC_W, _ENC_B = 0, 16
_MSG_W = 24
_POL_W, _POL_B = 56, 88
_ACT_W, _ACT_B = 96, 128
SLAB_ROWS = 136
SLAB_COLS = HIDDEN_DIM        # 32
OUT_LANES = 128               # lane-dense output slab


def gnn_comm_kernel(x_ref, comm_ref, w_ref, out_ref):
    """Entire batch + all layers fused; runs once (no grid)."""
    f32 = jnp.float32
    x = x_ref[...]                                      # [BN, INPUT_DIM]
    comm = comm_ref[...]                                # [BN, BN] block-diag comm

    # --- encoder: relu(x @ W_enc + b_enc) -----------------------------------
    h = jnp.maximum(
        jnp.dot(x, w_ref[_ENC_W:_ENC_W + INPUT_DIM, :],
                preferred_element_type=f32)
        + w_ref[_ENC_B:_ENC_B + 1, :], 0.0)             # [BN, H]

    # --- K rounds of message passing: h = relu((comm @ h) @ W_msg), no bias --
    w_msg = w_ref[_MSG_W:_MSG_W + MSG_HIDDEN_DIM, :]
    for _ in range(K):
        m = jnp.dot(comm, h, preferred_element_type=f32)          # [BN, H]
        h = jnp.maximum(jnp.dot(m, w_msg, preferred_element_type=f32), 0.0)

    # --- policy head: relu(h @ W_pol + b_pol) -------------------------------
    p = jnp.maximum(
        jnp.dot(h, w_ref[_POL_W:_POL_W + MSG_HIDDEN_DIM, :],
                preferred_element_type=f32)
        + w_ref[_POL_B:_POL_B + 1, :], 0.0)             # [BN, H]

    # --- actions head: relu(p @ W_act + b_act) ------------------------------
    # W_act / b_act are zero-padded to 32 cols, so lanes N_ACTIONS..31 = relu(0)=0.
    a = jnp.maximum(
        jnp.dot(p, w_ref[_ACT_W:_ACT_W + HIDDEN_DIM, :],
                preferred_element_type=f32)
        + w_ref[_ACT_B:_ACT_B + 1, :], 0.0)             # [BN, 32]

    # one dense [8,128] store: lanes 0..31 = h, 32..39 = actions, rest zero
    pad = jnp.zeros((BN, OUT_LANES - 2 * HIDDEN_DIM), f32)
    out_ref[...] = jnp.concatenate([p, a, pad], axis=-1)


def init_params(key):
    """Deterministic synthetic parameters (shapes follow the nn.Module)."""
    ks = jax.random.split(key, 8)
    scale = 0.1
    w_enc = scale * jax.random.normal(ks[0], (INPUT_DIM, HIDDEN_DIM), jnp.float32)
    b_enc = scale * jax.random.normal(ks[1], (1, HIDDEN_DIM), jnp.float32)
    w_msg = scale * jax.random.normal(ks[2], (MSG_HIDDEN_DIM, MSG_HIDDEN_DIM), jnp.float32)
    w_pol = scale * jax.random.normal(ks[3], (MSG_HIDDEN_DIM, HIDDEN_DIM), jnp.float32)
    b_pol = scale * jax.random.normal(ks[4], (1, HIDDEN_DIM), jnp.float32)
    w_act = scale * jax.random.normal(ks[5], (HIDDEN_DIM, N_ACTIONS), jnp.float32)
    b_act = scale * jax.random.normal(ks[6], (1, N_ACTIONS), jnp.float32)
    return (w_enc, b_enc, w_msg, w_pol, b_pol, w_act, b_act)


def pack_params(params):
    """One-time glue: pack all weights/biases into one [136,32] 8-row-aligned slab."""
    w_enc, b_enc, w_msg, w_pol, b_pol, w_act, b_act = params

    def rows(a, n):   # pad row count up to n
        return jnp.pad(a, ((0, n - a.shape[0]), (0, 0)))

    def cols(a):      # pad col count up to SLAB_COLS
        return jnp.pad(a, ((0, 0), (0, SLAB_COLS - a.shape[1])))

    slab = jnp.concatenate([
        w_enc,                 # rows   0:16
        rows(b_enc, 8),        # row   16   (17:24 zero)
        w_msg,                 # rows  24:56
        w_pol,                 # rows  56:88
        rows(b_pol, 8),        # row   88   (89:96 zero)
        cols(w_act),           # rows  96:128 (cols 8:32 zero)
        rows(cols(b_act), 8),  # row  128   (129:136 zero)
    ], axis=0)
    assert slab.shape == (SLAB_ROWS, SLAB_COLS)
    return slab


@jax.jit
def gnn_comm_forward(x, adj, w_slab):
    # calc_adjacency_hat: batch-invariant, computed once in plain JAX.
    a_hat = adj + jnp.eye(N_AGENTS, dtype=adj.dtype)
    d = jnp.power(a_hat.sum(1), -0.5)
    comm = d[:, None] * a_hat * d[None, :]                          # [n, n]
    comm_block = jnp.kron(jnp.eye(BATCH, dtype=comm.dtype), comm)   # [BN, BN]

    # x arrives agent-major ([n_agents * batch, input_dim], matching the
    # PyTorch h.view(n, -1, H).transpose(0, 1) convention); reorder to
    # batch-major flat rows so one block-diag matmul realizes the batched bmm.
    x_flat = (x.reshape(N_AGENTS, BATCH, INPUT_DIM)
              .transpose(1, 0, 2).reshape(BN, INPUT_DIM))

    out = pl.pallas_call(
        gnn_comm_kernel,
        out_shape=jax.ShapeDtypeStruct((BN, OUT_LANES), jnp.float32),
    )(x_flat, comm_block, w_slab)

    h = out[:, :HIDDEN_DIM].reshape(BATCH, N_AGENTS, HIDDEN_DIM)
    actions = out[:, HIDDEN_DIM:HIDDEN_DIM + N_ACTIONS].reshape(
        BATCH, N_AGENTS, N_ACTIONS)
    return actions, h


def reference_forward(x, adj, params):
    """Pure-JAX reference mirroring the PyTorch forward (bmm interpretation)."""
    w_enc, b_enc, w_msg, w_pol, b_pol, w_act, b_act = params
    a_hat = adj + jnp.eye(N_AGENTS, dtype=adj.dtype)
    d = jnp.power(a_hat.sum(1), -0.5)
    comm = jnp.diag(d) @ a_hat @ jnp.diag(d)
    h = jax.nn.relu(x @ w_enc + b_enc)                               # [n*B, H]
    h = h.reshape(N_AGENTS, BATCH, HIDDEN_DIM).transpose(1, 0, 2)    # [B, n, H]
    for _ in range(K):
        h = jax.nn.relu(jnp.einsum('ij,bjh->bih', comm, h) @ w_msg)
    h = jax.nn.relu(h @ w_pol + b_pol)
    actions = jax.nn.relu(h @ w_act + b_act)
    return actions, h


if __name__ == "__main__":
    key = jax.random.PRNGKey(0)
    k_x, k_adj, k_p = jax.random.split(key, 3)

    # inputs: x is [n_agents * batch, input_dim]; adj is a symmetric 0/1 matrix.
    x = jax.random.normal(k_x, (N_AGENTS * BATCH, INPUT_DIM), jnp.float32)
    upper = (jax.random.uniform(k_adj, (N_AGENTS, N_AGENTS)) > 0.5).astype(jnp.float32)
    adj = jnp.triu(upper, 1)
    adj = adj + adj.T                                                # symmetric, no self-loops

    params = init_params(k_p)
    w_slab = pack_params(params)                                     # one-time packing

    actions, h = gnn_comm_forward(x, adj, w_slab)
    jax.block_until_ready((actions, h))

    ref_actions, ref_h = reference_forward(x, adj, params)
    assert actions.shape == (BATCH, N_AGENTS, N_ACTIONS)
    assert h.shape == (BATCH, N_AGENTS, HIDDEN_DIM)
    assert jnp.allclose(actions, ref_actions, rtol=1e-5, atol=1e-5)
    assert jnp.allclose(h, ref_h, rtol=1e-5, atol=1e-5)

    print("KERNEL_OK")
</pallas_src>

<mosaic_0001>
module attributes {stable_mosaic.version = 11 : i64} {
  func.func @gnn_comm_kernel(%arg0: memref<8x16xf32, #tpu.memory_space<vmem>>, %arg1: memref<8x8xf32, #tpu.memory_space<vmem>>, %arg2: memref<136x32xf32, #tpu.memory_space<vmem>>, %arg3: memref<8x128xf32, #tpu.memory_space<vmem>>) attributes {dimension_semantics = [], scalar_prefetch = 0 : i64, scratch_operands = 0 : i64, tpu.core_type = #tpu.core_type<tc>} {
    %c0 = arith.constant 0 : index
    %c0_0 = arith.constant 0 : index
    %0 = vector.load %arg0[%c0, %c0_0] : memref<8x16xf32, #tpu.memory_space<vmem>>, vector<8x16xf32>
    %c0_1 = arith.constant 0 : index
    %c0_2 = arith.constant 0 : index
    %1 = vector.load %arg1[%c0_1, %c0_2] : memref<8x8xf32, #tpu.memory_space<vmem>>, vector<8x8xf32>
    %c0_3 = arith.constant 0 : index
    %c0_4 = arith.constant 0 : index
    %2 = vector.load %arg2[%c0_3, %c0_4] : memref<136x32xf32, #tpu.memory_space<vmem>>, vector<16x32xf32>
    %cst = arith.constant dense<0.000000e+00> : vector<8x32xf32>
    %3 = tpu.matmul %0, %2, %cst {dimension_numbers = #tpu.dot_dimension_numbers<[1], [0], [0], [1], [0, 0, 1, 1], [], []>} : vector<8x16xf32>, vector<16x32xf32>, vector<8x32xf32> -> vector<8x32xf32>
    %c16 = arith.constant 16 : index
    %c0_5 = arith.constant 0 : index
    %4 = vector.load %arg2[%c16, %c0_5] : memref<136x32xf32, #tpu.memory_space<vmem>>, vector<1x32xf32>
    %5 = vector.broadcast %4 : vector<1x32xf32> to vector<8x32xf32>
    %6 = arith.addf %3, %5 : vector<8x32xf32>
    %cst_6 = arith.constant 0.000000e+00 : f32
    %7 = vector.broadcast %cst_6 : f32 to vector<8x32xf32>
    %8 = arith.maximumf %6, %7 : vector<8x32xf32>
    %c24 = arith.constant 24 : index
    %c0_7 = arith.constant 0 : index
    %9 = vector.load %arg2[%c24, %c0_7] : memref<136x32xf32, #tpu.memory_space<vmem>>, vector<32x32xf32>
    %cst_8 = arith.constant dense<0.000000e+00> : vector<8x32xf32>
    %10 = tpu.matmul %1, %8, %cst_8 {dimension_numbers = #tpu.dot_dimension_numbers<[1], [0], [0], [1], [0, 0, 1, 1], [], []>} : vector<8x8xf32>, vector<8x32xf32>, vector<8x32xf32> -> vector<8x32xf32>
    %cst_9 = arith.constant dense<0.000000e+00> : vector<8x32xf32>
    %11 = tpu.matmul %10, %9, %cst_9 {dimension_numbers = #tpu.dot_dimension_numbers<[1], [0], [0], [1], [0, 0, 1, 1], [], []>} : vector<8x32xf32>, vector<32x32xf32>, vector<8x32xf32> -> vector<8x32xf32>
    %cst_10 = arith.constant 0.000000e+00 : f32
    %12 = vector.broadcast %cst_10 : f32 to vector<8x32xf32>
    %13 = arith.maximumf %11, %12 : vector<8x32xf32>
    %cst_11 = arith.constant dense<0.000000e+00> : vector<8x32xf32>
    %14 = tpu.matmul %1, %13, %cst_11 {dimension_numbers = #tpu.dot_dimension_numbers<[1], [0], [0], [1], [0, 0, 1, 1], [], []>} : vector<8x8xf32>, vector<8x32xf32>, vector<8x32xf32> -> vector<8x32xf32>
    %cst_12 = arith.constant dense<0.000000e+00> : vector<8x32xf32>
    %15 = tpu.matmul %14, %9, %cst_12 {dimension_numbers = #tpu.dot_dimension_numbers<[1], [0], [0], [1], [0, 0, 1, 1], [], []>} : vector<8x32xf32>, vector<32x32xf32>, vector<8x32xf32> -> vector<8x32xf32>
    %cst_13 = arith.constant 0.000000e+00 : f32
    %16 = vector.broadcast %cst_13 : f32 to vector<8x32xf32>
    %17 = arith.maximumf %15, %16 : vector<8x32xf32>
    %c56 = arith.constant 56 : index
    %c0_14 = arith.constant 0 : index
    %18 = vector.load %arg2[%c56, %c0_14] : memref<136x32xf32, #tpu.memory_space<vmem>>, vector<32x32xf32>
    %cst_15 = arith.constant dense<0.000000e+00> : vector<8x32xf32>
    %19 = tpu.matmul %17, %18, %cst_15 {dimension_numbers = #tpu.dot_dimension_numbers<[1], [0], [0], [1], [0, 0, 1, 1], [], []>} : vector<8x32xf32>, vector<32x32xf32>, vector<8x32xf32> -> vector<8x32xf32>
    %c88 = arith.constant 88 : index
    %c0_16 = arith.constant 0 : index
    %20 = vector.load %arg2[%c88, %c0_16] : memref<136x32xf32, #tpu.memory_space<vmem>>, vector<1x32xf32>
    %21 = vector.broadcast %20 : vector<1x32xf32> to vector<8x32xf32>
    %22 = arith.addf %19, %21 : vector<8x32xf32>
    %cst_17 = arith.constant 0.000000e+00 : f32
    %23 = vector.broadcast %cst_17 : f32 to vector<8x32xf32>
    %24 = arith.maximumf %22, %23 : vector<8x32xf32>
    %c96 = arith.constant 96 : index
    %c0_18 = arith.constant 0 : index
    %25 = vector.load %arg2[%c96, %c0_18] : memref<136x32xf32, #tpu.memory_space<vmem>>, vector<32x32xf32>
    %cst_19 = arith.constant dense<0.000000e+00> : vector<8x32xf32>
    %26 = tpu.matmul %24, %25, %cst_19 {dimension_numbers = #tpu.dot_dimension_numbers<[1], [0], [0], [1], [0, 0, 1, 1], [], []>} : vector<8x32xf32>, vector<32x32xf32>, vector<8x32xf32> -> vector<8x32xf32>
    %c128 = arith.constant 128 : index
    %c0_20 = arith.constant 0 : index
    %27 = vector.load %arg2[%c128, %c0_20] : memref<136x32xf32, #tpu.memory_space<vmem>>, vector<1x32xf32>
    %28 = vector.broadcast %27 : vector<1x32xf32> to vector<8x32xf32>
    %29 = arith.addf %26, %28 : vector<8x32xf32>
    %cst_21 = arith.constant 0.000000e+00 : f32
    %30 = vector.broadcast %cst_21 : f32 to vector<8x32xf32>
    %31 = arith.maximumf %29, %30 : vector<8x32xf32>
    %cst_22 = arith.constant 0.000000e+00 : f32
    %32 = vector.broadcast %cst_22 : f32 to vector<8x64xf32>
    %33 = tpu.concatenate %24, %31, %32 in 1 : vector<8x32xf32>, vector<8x32xf32>, vector<8x64xf32> -> vector<8x128xf32>
    %c0_23 = arith.constant 0 : index
    %c0_24 = arith.constant 0 : index
    %34 = vector.load %arg3[%c0_23, %c0_24] : memref<8x128xf32, #tpu.memory_space<vmem>>, vector<8x128xf32>
    tpu.vector_store %arg3[%c0_23, %c0_24], %33 {strides = array<i32>} : memref<8x128xf32, #tpu.memory_space<vmem>>, vector<8x128xf32>,
    return
  }
}

</mosaic_0001>

<bundles_post_ra>
// kernel: gnn_comm_forward.1
= control target key start
LH: loop header
LB: loop body
LE: loop exit
PB: predicated region body
PF: predicated region fallthrough
CT: control target
= control target key end

     0   :  { %vm20_vm0 = vcmask 130048   ;;  %vm49_vm1 = vcmask 64512   ;;  %vm73_vm2 = vcmask 261120   ;;  %s225_s21 = smov 32   ;;  %vm207_vm3 = vcmask 523264   ;;  %s311_s2 = inlined_call_operand.vmem [shape: f32[136,32], index: 2, kind: input, shape index: {}]   ;;  %s312_s0 = inlined_call_operand.vmem [shape: f32[8,16], index: 0, kind: input, shape index: {}]   ;;  %s313_s1 = inlined_call_operand.vmem [shape: f32[8,8], index: 1, kind: input, shape index: {}]   ;;  %s314_s3 = inlined_call_operand.vmem [shape: f32[8,128], index: 3, kind: output, shape index: {}]  }
   0x1   :  { %v17_v0 = vld [vmem:[%s311_s2 + $0x8] sm:$0xff]  ;;  %v16_v1 = vld [vmem:[%s311_s2] sm:$0xff]  ;;  %v48_v3 = vld [vmem:[%s311_s2 + $0x30] sm:$0xff] }
   0x2   :  { %v14_v2 = vld [vmem:[%s312_s0] sm:$0xff]  ;;  %38 = vmatpush.msra.mxu0 %v17_v0  ;;  %v47_v4 = vld [vmem:[%s311_s2 + $0x28] sm:$0xff]  ;;  %89 = vmatpush.msra.mxu2 %v48_v3  ;;  %v222_v6 = vld [vmem:[%s311_s2 + $0x10] ss:$0 sm:$0xff] }
   0x3   :  { %v46_v5 = vld [vmem:[%s311_s2 + $0x20] sm:$0xff]  ;;  %v45_v11 = vld [vmem:[%s311_s2 + $0x18] sm:$0xff]  ;;  %v145_v15 = vld [vmem:[%s311_s2 + $0x50] sm:$0xff] }
   0x4   :  { %39 = vmatpush.msra.mxu0 %v16_v1  ;;  %90 = vmatpush.msra.mxu2 %v47_v4  ;;  %v15_v10 = vld [vmem:[%s313_s1] sm:$0xff]  ;;  %v144_v16 = vld [vmem:[%s311_s2 + $0x48] sm:$0xff]  ;;  %v142_v19 = vld [vmem:[%s311_s2 + $0x38] sm:$0xff] }
   0x5   :  { %214 = vmatmul.msk.f32.vlgmr.msra.gmra.mxu0 %vm20_vm0, %v14_v2  ;;  %v143_v17 = vld [vmem:[%s311_s2 + $0x40] sm:$0xff]  ;;  %v175_v20 = vld [vmem:[%s311_s2 + $0x78] sm:$0xff]  ;;  %v174_v21 = vld [vmem:[%s311_s2 + $0x70] sm:$0xff] }
   0x6   :  { %91 = vmatpush.msra.mxu2 %v46_v5  ;;  %193 = vmatpush.msrb.mxu0 %v175_v20  ;;  %v173_v24 = vld [vmem:[%s311_s2 + $0x68] sm:$0xff]  ;;  %v172_v25 = vld [vmem:[%s311_s2 + $0x60] sm:$0xff]  ;;  %v223_v26 = vld [vmem:[%s311_s2 + $0x58] ss:$0 sm:$0xff] }
   0x7   :  { %v224_v30 = vld [vmem:[%s311_s2 + $0x80] ss:$0 sm:$0xff] }
   0x8   :  { %92 = vmatpush.msra.mxu2 %v45_v11  ;;  %194 = vmatpush.msrb.mxu0 %v174_v21 }
   0xa   :  { %195 = vmatpush.msrb.mxu0 %v173_v24 }
   0xc   :  { %196 = vmatpush.msrb.mxu0 %v172_v25 }
  0x82   :  { %v41_v7 = vpop.f32.mrf.mxu0 }
  0x83   :  { %v42_v8 = vadd.f32 %v222_v6, %v41_v7 }
  0x85   :  { %v44_v9 = vmax.f32 %v42_v8, 0.0 }
  0x87   :  { %68 = vmatpush.msra.mxu1 %v44_v9 }
  0x88   :  { %215 = vmatmul.msk.f32.vlgmr.msra.gmra.mxu1 %vm49_vm1, %v15_v10 }
  0x89   :  { %133 = vmatpush.msrb.mxu1 %v48_v3 }
  0x8b   :  { %134 = vmatpush.msrb.mxu1 %v47_v4 }
  0x8d   :  { %135 = vmatpush.msrb.mxu1 %v46_v5 }
  0x8f   :  { %136 = vmatpush.msrb.mxu1 %v45_v11 }
 0x105   :  { %v70_v12 = vpop.f32.mrf.mxu1 }
 0x106   :  { %216 = vmatmul.msk.f32.vlgmr.msra.gmra.mxu2 %vm73_vm2, %v70_v12 }
 0x189   :  { %v94_v13 = vpop.f32.mrf.mxu2 }
 0x18a   :  { %v97_v14 = vmax.f32 %v94_v13, 0.0 }
 0x18c   :  { %113 = vmatpush.msra.mxu3 %v97_v14 }
 0x18d   :  { %217 = vmatmul.msk.f32.vlgmr.msra.gmra.mxu3 %vm49_vm1, %v15_v10 }
 0x18e   :  { %163 = vmatpush.msrb.mxu3 %v145_v15 }
 0x190   :  { %164 = vmatpush.msrb.mxu3 %v144_v16 }
 0x192   :  { %165 = vmatpush.msrb.mxu3 %v143_v17 }
 0x194   :  { %166 = vmatpush.msrb.mxu3 %v142_v19 }
 0x210   :  { %v115_v18 = vpop.f32.mrf.mxu3 }
 0x211   :  { %218 = vmatmul.msk.f32.vlgmr.msrb.gmra.mxu1 %vm73_vm2, %v115_v18 }
 0x28e   :  { %v138_v22 = vpop.f32.mrf.mxu1 }
 0x28f   :  { %v141_v23 = vmax.f32 %v138_v22, 0.0 }
 0x291   :  { %219 = vmatmul.msk.f32.vlgmr.msrb.gmra.mxu3 %vm73_vm2, %v141_v23 }
 0x314   :  { %v168_v27 = vpop.f32.mrf.mxu3 }
 0x315   :  { %v169_v28 = vadd.f32 %v223_v26, %v168_v27 }
 0x317   :  { %v171_v29 = vmax.f32 %v169_v28, 0.0 }
 0x319   :  { %220 = vmatmul.msk.f32.vlgmr.msrb.gmra.mxu0 %vm73_vm2, %v171_v29 }
 0x396   :  { %v198_v31 = vpop.f32.mrf.mxu0 }
 0x397   :  { %v199_v32 = vadd.f32 %v224_v30, %v198_v31 }
 0x399   :  { %v201_v33 = vmax.f32 %v199_v32, 0.0 }
 0x39b   :  { %203 = vrot.lane.b32.xlu0 %v201_v33, %s225_s21 }
 0x40d   :  { %v204_v34 = vpop.permute.xlu0 %203 }
 0x40e   :  { %v206_v35 = vsel %vm73_vm2, %v171_v29, %v204_v34 }
 0x40f   :  { %v208_v36 = vsel %vm207_vm3, %v206_v35, 0.0 }
 0x410   :  { %209 = vst [vmem:[%s314_s3] sm:$0xff] %v208_v36 }

</bundles_post_ra>
